<compile_context>
chip_gen: v5e
topology: v5e:2x2
jax: 0.10.0
libtpu: 0.0.40
codegen_flags: <defaults>
</compile_context>

<pallas_src>
import functools

import jax
import jax.numpy as jnp
from jax import lax
from jax.experimental import pallas as pl
from jax.experimental.pallas import tpu as pltpu

ALPHA = 0.33
BETA = 0.33
GAMMA = 0.33
MARGIN = 0.8
EPS = 1e-8          # F.cosine_similarity eps (clamp on the norm)
EPS_SQ = EPS * EPS  # clamp on the squared norm (rsqrt form)


def _round_up(x, m):
    return ((x + m - 1) // m) * m


def _default_vmem_budget():
    """Generation-gated VMEM request: generous on 128-MiB chips (v5e/v6e),
    conservative headroom on v7x (64 MiB physical)."""
    try:
        phys = pltpu.get_tpu_info().vmem_capacity_bytes
    except Exception:
        phys = 64 * 1024 * 1024
    if phys >= 96 * 1024 * 1024:
        return 100 * 1024 * 1024
    return 48 * 1024 * 1024


def _pick_tile(n, c, itemsize, sublane, budget, max_tile):
    """Largest tile (multiple of the dtype sublane) whose double-buffered
    blocks + f32 temporaries fit the VMEM budget."""
    cap = max(sublane, min(max_tile, _round_up(n, sublane)))
    best = sublane
    t = sublane
    while t <= cap:
        # 2 bufs x (UEn_i + rows_a_i + UEn_j) + onehot_j  ~ 7*t*c*itemsize
        # ped / pcd / contrib f32 temporaries               ~ 20*t*t bytes
        need = 7 * t * c * itemsize + 20 * t * t + (2 << 20)
        if need <= budget:
            best = t
        t += sublane
    return best


# ---------------------------------------------------------------------------
# loss2: pairwise semantic-similarity kernel (circulant half-grid)
# ---------------------------------------------------------------------------
def _pair_kernel(uen_i_ref, ra_i_ref, uen_j_ref, lab_j_ref, out_ref, *,
                 n_true, n_tiles):
    ii = pl.program_id(0)
    jj = pl.program_id(1)
    jt = (ii + jj) % n_tiles                      # actual column tile index

    ti, c = uen_i_ref.shape
    tj = uen_j_ref.shape[0]

    @pl.when(jj == 0)
    def _init():
        out_ref[...] = jnp.zeros_like(out_ref)

    # pairwise cosine: rows pre-normalized in the wrapper, contract last dims
    # (same form as flash-attn q@k^T; MXU-native on TPU).
    uen_i = uen_i_ref[...]                        # [TI, C] (f32 or bf16)
    uen_j = uen_j_ref[...]                        # [TJ, C]
    ped = lax.dot_general(uen_i, uen_j, (((1,), (1,)), ((), ())),
                          preferred_element_type=jnp.float32)      # [TI, TJ]

    # pairwise class distance A[l_i, l_j]: rows_a = A[labels] precomputed in
    # the wrapper; only the column one-hot selection remains in the hot loop.
    ra_i = ra_i_ref[...]                          # [TI, C]
    lab_j = lab_j_ref[...]                        # [TJ, 1]
    onehot_j = (lax.broadcasted_iota(jnp.int32, (tj, c), 1) == lab_j
                ).astype(ra_i.dtype)              # [TJ, C]
    pcd = lax.dot_general(ra_i, onehot_j, (((1,), (1,)), ((), ())),
                          preferred_element_type=jnp.float32)      # [TI, TJ]

    row_id = ii * ti + lax.broadcasted_iota(jnp.int32, (ti, 1), 0)
    col_id = jt * tj + lax.broadcasted_iota(jnp.int32, (1, tj), 1)
    valid = (row_id < n_true) & (col_id < n_true)                  # padding

    keep = (pcd < MARGIN) & (ped < MARGIN) & valid
    diff = ped - pcd
    contrib = jnp.where(keep, diff * diff, 0.0)

    # circulant weighting: diag tile once; each off-diag unordered pair is
    # enumerated once (weight 2) except the antipodal column when n_tiles is
    # even (enumerated twice -> weight 1).
    factor = jnp.where((jj == 0) | (2 * jj == n_tiles), 1.0, 2.0)
    scale = BETA / (n_true * n_true)
    out_ref[...] += jnp.sum(contrib) * factor * scale


# ---------------------------------------------------------------------------
# loss1 + loss3: O(N*C)/O(N*D) row-only kernel
# ---------------------------------------------------------------------------
def _row_kernel(ue_ref, lab_ref, img_ref, txt_ref, out_ref, *, n_true):
    ii = pl.program_id(0)
    ti, c = ue_ref.shape

    ue = ue_ref[...].astype(jnp.float32)                           # [TI, C]
    lab = lab_ref[...]                                             # [TI, 1]
    row_id = ii * ti + lax.broadcasted_iota(jnp.int32, (ti, 1), 0)
    valid = row_id < n_true

    # cross entropy
    onehot = (lax.broadcasted_iota(jnp.int32, (ti, c), 1) == lab
              ).astype(jnp.float32)
    m = jnp.max(ue, axis=-1, keepdims=True)
    shifted = ue - m
    lse = jnp.log(jnp.sum(jnp.exp(shifted), axis=-1, keepdims=True))
    ce = lse - jnp.sum(onehot * shifted, axis=-1, keepdims=True)
    ce = jnp.where(valid, ce, 0.0)
    loss1 = jnp.sum(ce) * (ALPHA / n_true)

    # cross-modal cosine similarity (rsqrt on the EUP)
    img = img_ref[...].astype(jnp.float32)
    txt = txt_ref[...].astype(jnp.float32)
    inv_ni = lax.rsqrt(jnp.maximum(
        jnp.sum(img * img, axis=-1, keepdims=True), EPS_SQ))
    inv_nt = lax.rsqrt(jnp.maximum(
        jnp.sum(txt * txt, axis=-1, keepdims=True), EPS_SQ))
    cos3 = jnp.sum(img * txt, axis=-1, keepdims=True) * (inv_ni * inv_nt)
    cos3 = jnp.where(valid, cos3, 0.0)
    loss3 = jnp.sum(cos3) * (GAMMA / n_true)

    out_ref[...] = jnp.full(out_ref.shape, loss1 + loss3, dtype=jnp.float32)


# ---------------------------------------------------------------------------
# wrapper
# ---------------------------------------------------------------------------
def embedding_space_loss(UE, UE_image, UE_text, labels, A, *,
                         max_tile=512, matmul_dtype=jnp.float32,
                         vmem_budget_bytes=None):
    """UE: [N, C] universal embeddings (logits), UE_image/UE_text: [N, D],
    labels: [N] int, A: [C, C] symmetric semantic graph. Returns f32 scalar.
    matmul_dtype=jnp.bfloat16 runs the MXU matmuls with bf16 operands
    (f32 accumulation) - faster on bf16-native MXUs, small tolerance cost."""
    N, C = UE.shape
    D = UE_image.shape[1]

    matmul_dtype = jnp.dtype(matmul_dtype)
    itemsize = matmul_dtype.itemsize
    sublane = 16 if itemsize == 2 else 8
    if vmem_budget_bytes is None:
        vmem_budget_bytes = _default_vmem_budget()

    tile = _pick_tile(N, C, itemsize, sublane, vmem_budget_bytes, max_tile)
    n_pad = _round_up(N, tile)
    n_tiles = n_pad // tile
    n_d = n_tiles // 2 + 1            # circulant: diagonal + ~half off-diag
    pad_n = n_pad - N

    labels = labels.astype(jnp.int32)

    # ---- hoisted O(N*C) precompute (one fused XLA pass, outside N^2 loop) --
    ue_f32 = UE.astype(jnp.float32)
    inv = lax.rsqrt(jnp.maximum(
        jnp.sum(ue_f32 * ue_f32, axis=-1, keepdims=True), EPS_SQ))
    UEn = (ue_f32 * inv).astype(matmul_dtype)         # pre-normalized rows
    rows_a = A.astype(matmul_dtype)[labels]           # A[labels] : [N, C]

    UEn_p = jnp.pad(UEn, ((0, pad_n), (0, 0)))
    ra_p = jnp.pad(rows_a, ((0, pad_n), (0, 0)))
    lab_p = jnp.pad(labels, (0, pad_n)).reshape(n_pad, 1)
    UE_p = jnp.pad(UE, ((0, pad_n), (0, 0)))
    img_p = jnp.pad(UE_image, ((0, pad_n), (0, 0)))
    txt_p = jnp.pad(UE_text, ((0, pad_n), (0, 0)))

    # ---- loss2: pairwise kernel over the circulant half-grid ---------------
    pair_kernel = functools.partial(_pair_kernel, n_true=N, n_tiles=n_tiles)
    pair_steps = n_tiles * n_d
    pair_flops = int(pair_steps * (4 * tile * tile * C + 12 * tile * tile))
    pair_bytes = int(pair_steps * (3 * tile * C * itemsize + 4 * tile)
                     + n_tiles * 128 * 4)

    loss2_parts = pl.pallas_call(
        pair_kernel,
        out_shape=jax.ShapeDtypeStruct((n_tiles, 1, 128), jnp.float32),
        grid_spec=pltpu.PrefetchScalarGridSpec(
            num_scalar_prefetch=0,
            grid=(n_tiles, n_d),
            in_specs=[
                pl.BlockSpec((tile, C), lambda i, j: (i, 0)),   # UEn rows
                pl.BlockSpec((tile, C), lambda i, j: (i, 0)),   # A[labels] rows
                pl.BlockSpec((tile, C),
                             lambda i, j: ((i + j) % n_tiles, 0)),  # UEn cols
                pl.BlockSpec((tile, 1),
                             lambda i, j: ((i + j) % n_tiles, 0)),  # labels cols
            ],
            out_specs=pl.BlockSpec((1, 1, 128), lambda i, j: (i, 0, 0)),
        ),
        compiler_params=pltpu.CompilerParams(
            dimension_semantics=("parallel", "arbitrary"),
            vmem_limit_bytes=int(vmem_budget_bytes),
        ),
        cost_estimate=pl.CostEstimate(flops=pair_flops, transcendentals=0,
                                      bytes_accessed=pair_bytes),
    )(UEn_p, ra_p, UEn_p, lab_p)

    # ---- loss1 + loss3: tiny row kernel -------------------------------------
    row_kernel = functools.partial(_row_kernel, n_true=N)
    row_flops = int(n_pad * (6 * C + 8 * D))
    row_bytes = int(4 * n_pad * (C + 2 * D + 1) + n_tiles * 128 * 4)

    rows_out = pl.pallas_call(
        row_kernel,
        out_shape=jax.ShapeDtypeStruct((n_tiles, 1, 128), jnp.float32),
        grid_spec=pltpu.PrefetchScalarGridSpec(
            num_scalar_prefetch=0,
            grid=(n_tiles,),
            in_specs=[
                pl.BlockSpec((tile, C), lambda i: (i, 0)),   # raw UE rows
                pl.BlockSpec((tile, 1), lambda i: (i, 0)),   # labels rows
                pl.BlockSpec((tile, D), lambda i: (i, 0)),   # image rows
                pl.BlockSpec((tile, D), lambda i: (i, 0)),   # text rows
            ],
            out_specs=pl.BlockSpec((1, 1, 128), lambda i: (i, 0, 0)),
        ),
        compiler_params=pltpu.CompilerParams(
            dimension_semantics=("parallel",),
            vmem_limit_bytes=int(vmem_budget_bytes),
        ),
        cost_estimate=pl.CostEstimate(flops=row_flops,
                                      transcendentals=int(n_pad * C),
                                      bytes_accessed=row_bytes),
    )(UE_p, lab_p, img_p, txt_p)

    return jnp.sum(loss2_parts[:, 0, 0]) + jnp.sum(rows_out[:, 0, 0])


# ---------------------------------------------------------------------------
# pure-JAX reference + demo
# ---------------------------------------------------------------------------
def _reference(UE, UE_image, UE_text, labels, A):
    N, C = UE.shape
    logp = jax.nn.log_softmax(UE, axis=-1)
    loss1 = -jnp.mean(logp[jnp.arange(N), labels])
    norm = jnp.maximum(jnp.linalg.norm(UE, axis=-1, keepdims=True), EPS)
    UEn = UE / norm
    ped = UEn @ UEn.T
    pcd = A[labels[:, None], labels[None, :]]
    sigma = ((pcd < MARGIN) & (ped < MARGIN)).astype(jnp.float32)
    loss2 = jnp.mean(sigma * (ped - pcd) ** 2)
    ni = jnp.maximum(jnp.linalg.norm(UE_image, axis=-1), EPS)
    nt = jnp.maximum(jnp.linalg.norm(UE_text, axis=-1), EPS)
    loss3 = jnp.mean(jnp.sum(UE_image * UE_text, axis=-1) / (ni * nt))
    return ALPHA * loss1 + BETA * loss2 + GAMMA * loss3


def _make_inputs(key, N, num_classes, D):
    k1, k2, k3, k4, k5 = jax.random.split(key, 5)
    UE = jax.random.normal(k1, (N, num_classes), dtype=jnp.float32)
    UE_image = jax.random.normal(k2, (N, D), dtype=jnp.float32)
    UE_text = jax.random.normal(k3, (N, D), dtype=jnp.float32)
    labels = jax.random.randint(k4, (N,), 0, num_classes, dtype=jnp.int32)
    A_raw = jax.random.uniform(k5, (num_classes, num_classes), dtype=jnp.float32)
    A = (A_raw + A_raw.T) * 0.5                       # symmetric semantic graph
    A = A * (1.0 - jnp.eye(num_classes, dtype=jnp.float32))
    return UE, UE_image, UE_text, labels, A


if __name__ == "__main__":
    # --- case 1: small demo shapes (single tile, f32) -----------------------
    UE, img, txt, lab, A = _make_inputs(jax.random.PRNGKey(0),
                                        N=8, num_classes=32, D=32)
    loss = jax.block_until_ready(embedding_space_loss(UE, img, txt, lab, A))
    ref = _reference(UE, img, txt, lab, A)
    assert jnp.allclose(loss, ref, atol=1e-4, rtol=1e-4), (loss, ref)

    # --- case 2: tiling + padding + circulant half-grid (f32) ---------------
    UE2, img2, txt2, lab2, A2 = _make_inputs(jax.random.PRNGKey(1),
                                             N=20, num_classes=32, D=32)
    loss2 = jax.block_until_ready(
        embedding_space_loss(UE2, img2, txt2, lab2, A2, max_tile=8))
    ref2 = _reference(UE2, img2, txt2, lab2, A2)
    assert jnp.allclose(loss2, ref2, atol=1e-4, rtol=1e-4), (loss2, ref2)

    # --- case 3: bf16 MXU operands (f32 accumulation), tiled -----------------
    UE3, img3, txt3, lab3, A3 = _make_inputs(jax.random.PRNGKey(2),
                                             N=48, num_classes=64, D=32)
    loss3 = jax.block_until_ready(
        embedding_space_loss(UE3, img3, txt3, lab3, A3,
                             max_tile=16, matmul_dtype=jnp.bfloat16))
    ref3 = _reference(UE3, img3, txt3, lab3, A3)
    assert jnp.allclose(loss3, ref3, atol=2e-2, rtol=2e-2), (loss3, ref3)

    print("KERNEL_OK")
</pallas_src>

<mosaic_0001>
module attributes {stable_mosaic.version = 11 : i64} {
  func.func @_pair_kernel(%arg0: i32, %arg1: i32, %arg2: memref<8x32xf32, #tpu.memory_space<vmem>>, %arg3: memref<8x32xf32, #tpu.memory_space<vmem>>, %arg4: memref<8x32xf32, #tpu.memory_space<vmem>>, %arg5: memref<8x1xi32, #tpu.memory_space<vmem>>, %arg6: memref<1x1x128xf32, #tpu.memory_space<vmem>>) attributes {dimension_semantics = [#tpu.dimension_semantics<parallel>, #tpu.dimension_semantics<arbitrary>], iteration_bounds = array<i64: 1, 1>, scalar_prefetch = 0 : i64, scratch_operands = 0 : i64, tpu.core_type = #tpu.core_type<tc>, window_params = [{transform_indices = @transform_0, window_bounds = array<i64: 8, 32>}, {transform_indices = @transform_1, window_bounds = array<i64: 8, 32>}, {transform_indices = @transform_2, window_bounds = array<i64: 8, 32>}, {transform_indices = @transform_3, window_bounds = array<i64: 8, 1>}, {transform_indices = @transform_4, window_bounds = array<i64: 1, 1, 128>}]} {
    %0 = arith.addi %arg0, %arg1 : i32
    %c1_i32 = arith.constant 1 : i32
    %c0_i32 = arith.constant 0 : i32
    %1 = arith.cmpi eq, %c1_i32, %c0_i32 : i32
    %c1_i32_0 = arith.constant 1 : i32
    %2 = arith.select %1, %c1_i32_0, %c1_i32 : i32
    %3 = arith.remsi %0, %2 : i32
    %c0_i32_1 = arith.constant 0 : i32
    %4 = arith.cmpi ne, %3, %c0_i32_1 : i32
    %c0_i32_2 = arith.constant 0 : i32
    %5 = arith.cmpi slt, %3, %c0_i32_2 : i32
    %c0_i32_3 = arith.constant 0 : i32
    %6 = arith.cmpi slt, %2, %c0_i32_3 : i32
    %7 = arith.xori %5, %6 : i1
    %8 = arith.andi %7, %4 : i1
    %9 = arith.addi %3, %2 : i32
    %10 = arith.select %8, %9, %3 : i32
    %c0_i32_4 = arith.constant 0 : i32
    %11 = arith.cmpi eq, %arg1, %c0_i32_4 : i32
    %12 = arith.extui %11 : i1 to i32
    %c0_i32_5 = arith.constant 0 : i32
    %13 = arith.cmpi ne, %12, %c0_i32_5 : i32
    scf.if %13 {
      %cst_32 = arith.constant 0.000000e+00 : f32
      %65 = vector.broadcast %cst_32 : f32 to vector<1x1x128xf32>
      %c0_33 = arith.constant 0 : index
      %c0_34 = arith.constant 0 : index
      %c0_35 = arith.constant 0 : index
      %66 = vector.load %arg6[%c0_33, %c0_34, %c0_35] : memref<1x1x128xf32, #tpu.memory_space<vmem>>, vector<1x1x128xf32>
      tpu.vector_store %arg6[%c0_33, %c0_34, %c0_35], %65 {strides = array<i32>} : memref<1x1x128xf32, #tpu.memory_space<vmem>>, vector<1x1x128xf32>,
    } else {
    }
    %c0 = arith.constant 0 : index
    %c0_6 = arith.constant 0 : index
    %14 = vector.load %arg2[%c0, %c0_6] : memref<8x32xf32, #tpu.memory_space<vmem>>, vector<8x32xf32>
    %c0_7 = arith.constant 0 : index
    %c0_8 = arith.constant 0 : index
    %15 = vector.load %arg4[%c0_7, %c0_8] : memref<8x32xf32, #tpu.memory_space<vmem>>, vector<8x32xf32>
    %cst = arith.constant dense<0.000000e+00> : vector<8x8xf32>
    %16 = tpu.matmul %14, %15, %cst {dimension_numbers = #tpu.dot_dimension_numbers<[1], [1], [0], [0], [0, 0, 1, 0], [], []>} : vector<8x32xf32>, vector<8x32xf32>, vector<8x8xf32> -> vector<8x8xf32>
    %c0_9 = arith.constant 0 : index
    %c0_10 = arith.constant 0 : index
    %17 = vector.load %arg3[%c0_9, %c0_10] : memref<8x32xf32, #tpu.memory_space<vmem>>, vector<8x32xf32>
    %c0_11 = arith.constant 0 : index
    %c0_12 = arith.constant 0 : index
    %18 = vector.load %arg5[%c0_11, %c0_12] : memref<8x1xi32, #tpu.memory_space<vmem>>, vector<8x1xi32>
    %19 = tpu.iota {dimensions = array<i32: 1>} : vector<8x32xi32>
    %20 = vector.broadcast %18 : vector<8x1xi32> to vector<8x32xi32>
    %21 = arith.cmpi eq, %19, %20 : vector<8x32xi32>
    %22 = arith.extui %21 : vector<8x32xi1> to vector<8x32xi32>
    %23 = arith.sitofp %22 : vector<8x32xi32> to vector<8x32xf32>
    %cst_13 = arith.constant dense<0.000000e+00> : vector<8x8xf32>
    %24 = tpu.matmul %17, %23, %cst_13 {dimension_numbers = #tpu.dot_dimension_numbers<[1], [1], [0], [0], [0, 0, 1, 0], [], []>} : vector<8x32xf32>, vector<8x32xf32>, vector<8x8xf32> -> vector<8x8xf32>
    %c8_i32 = arith.constant 8 : i32
    %25 = arith.muli %arg0, %c8_i32 : i32
    %26 = tpu.iota {dimensions = array<i32: 0>} : vector<8x1xi32>
    %27 = vector.broadcast %25 : i32 to vector<8x1xi32>
    %28 = arith.addi %27, %26 : vector<8x1xi32>
    %c8_i32_14 = arith.constant 8 : i32
    %29 = arith.muli %10, %c8_i32_14 : i32
    %30 = tpu.iota {dimensions = array<i32: 1>} : vector<1x8xi32>
    %31 = vector.broadcast %29 : i32 to vector<1x8xi32>
    %32 = arith.addi %31, %30 : vector<1x8xi32>
    %c8_i32_15 = arith.constant 8 : i32
    %33 = vector.broadcast %c8_i32_15 : i32 to vector<8x1xi32>
    %34 = arith.cmpi slt, %28, %33 : vector<8x1xi32>
    %c8_i32_16 = arith.constant 8 : i32
    %35 = vector.broadcast %c8_i32_16 : i32 to vector<1x8xi32>
    %36 = arith.cmpi slt, %32, %35 : vector<1x8xi32>
    %37 = vector.broadcast %34 : vector<8x1xi1> to vector<8x8xi1>
    %38 = vector.broadcast %36 : vector<1x8xi1> to vector<8x8xi1>
    %39 = arith.andi %37, %38 : vector<8x8xi1>
    %cst_17 = arith.constant 8.000000e-01 : f32
    %40 = vector.broadcast %cst_17 : f32 to vector<8x8xf32>
    %41 = arith.cmpf olt, %24, %40 : vector<8x8xf32>
    %cst_18 = arith.constant 8.000000e-01 : f32
    %42 = vector.broadcast %cst_18 : f32 to vector<8x8xf32>
    %43 = arith.cmpf olt, %16, %42 : vector<8x8xf32>
    %44 = arith.andi %41, %43 : vector<8x8xi1>
    %45 = arith.andi %44, %39 : vector<8x8xi1>
    %46 = arith.subf %16, %24 : vector<8x8xf32>
    %47 = arith.mulf %46, %46 : vector<8x8xf32>
    %cst_19 = arith.constant 0.000000e+00 : f32
    %48 = vector.broadcast %cst_19 : f32 to vector<8x8xf32>
    %49 = arith.select %45, %47, %48 : vector<8x8xi1>, vector<8x8xf32>
    %c0_i32_20 = arith.constant 0 : i32
    %50 = arith.cmpi eq, %arg1, %c0_i32_20 : i32
    %c2_i32 = arith.constant 2 : i32
    %51 = arith.muli %c2_i32, %arg1 : i32
    %c1_i32_21 = arith.constant 1 : i32
    %52 = arith.cmpi eq, %51, %c1_i32_21 : i32
    %53 = arith.ori %50, %52 : i1
    %cst_22 = arith.constant 1.000000e+00 : f32
    %cst_23 = arith.constant 2.000000e+00 : f32
    %54 = arith.select %53, %cst_22, %cst_23 : f32
    %c0_24 = arith.constant 0 : index
    %c0_25 = arith.constant 0 : index
    %c0_26 = arith.constant 0 : index
    %55 = vector.load %arg6[%c0_24, %c0_25, %c0_26] : memref<1x1x128xf32, #tpu.memory_space<vmem>>, vector<1x1x128xf32>
    %56 = vector.shape_cast %49 : vector<8x8xf32> to vector<1x8x8xf32>
    %cst_27 = arith.constant dense<0.000000e+00> : vector<1xf32>
    %57 = vector.multi_reduction <add>, %56, %cst_27 [1, 2] : vector<1x8x8xf32> to vector<1xf32>
    %58 = vector.shape_cast %57 : vector<1xf32> to vector<1x1x1xf32>
    %59 = vector.extract %58[0, 0, 0] : f32 from vector<1x1x1xf32>
    %60 = arith.mulf %59, %54 : f32
    %cst_28 = arith.constant 5.156250e-03 : f32
    %61 = arith.mulf %60, %cst_28 : f32
    %62 = vector.broadcast %61 : f32 to vector<1x1x128xf32>
    %63 = arith.addf %55, %62 : vector<1x1x128xf32>
    %c0_29 = arith.constant 0 : index
    %c0_30 = arith.constant 0 : index
    %c0_31 = arith.constant 0 : index
    %64 = vector.load %arg6[%c0_29, %c0_30, %c0_31] : memref<1x1x128xf32, #tpu.memory_space<vmem>>, vector<1x1x128xf32>
    tpu.vector_store %arg6[%c0_29, %c0_30, %c0_31], %63 {strides = array<i32>} : memref<1x1x128xf32, #tpu.memory_space<vmem>>, vector<1x1x128xf32>,
    return
  }
  func.func @transform_0(%arg0: i32, %arg1: i32) -> (i32, i32) {
    %c0_i32 = arith.constant 0 : i32
    %c0_i32_0 = arith.constant 0 : i32
    return %arg0, %c0_i32 : i32, i32
  }
  func.func @transform_1(%arg0: i32, %arg1: i32) -> (i32, i32) {
    %c0_i32 = arith.constant 0 : i32
    %c0_i32_0 = arith.constant 0 : i32
    return %arg0, %c0_i32 : i32, i32
  }
  func.func @transform_2(%arg0: i32, %arg1: i32) -> (i32, i32) {
    %0 = arith.addi %arg0, %arg1 : i32
    %c1_i32 = arith.constant 1 : i32
    %c0_i32 = arith.constant 0 : i32
    %1 = arith.cmpi eq, %c1_i32, %c0_i32 : i32
    %c1_i32_0 = arith.constant 1 : i32
    %2 = arith.select %1, %c1_i32_0, %c1_i32 : i32
    %3 = arith.remsi %0, %2 : i32
    %c0_i32_1 = arith.constant 0 : i32
    %4 = arith.cmpi ne, %3, %c0_i32_1 : i32
    %c0_i32_2 = arith.constant 0 : i32
    %5 = arith.cmpi slt, %3, %c0_i32_2 : i32
    %c0_i32_3 = arith.constant 0 : i32
    %6 = arith.cmpi slt, %2, %c0_i32_3 : i32
    %7 = arith.xori %5, %6 : i1
    %8 = arith.andi %7, %4 : i1
    %9 = arith.addi %3, %2 : i32
    %10 = arith.select %8, %9, %3 : i32
    %c0_i32_4 = arith.constant 0 : i32
    %c0_i32_5 = arith.constant 0 : i32
    return %10, %c0_i32_4 : i32, i32
  }
  func.func @transform_3(%arg0: i32, %arg1: i32) -> (i32, i32) {
    %0 = arith.addi %arg0, %arg1 : i32
    %c1_i32 = arith.constant 1 : i32
    %c0_i32 = arith.constant 0 : i32
    %1 = arith.cmpi eq, %c1_i32, %c0_i32 : i32
    %c1_i32_0 = arith.constant 1 : i32
    %2 = arith.select %1, %c1_i32_0, %c1_i32 : i32
    %3 = arith.remsi %0, %2 : i32
    %c0_i32_1 = arith.constant 0 : i32
    %4 = arith.cmpi ne, %3, %c0_i32_1 : i32
    %c0_i32_2 = arith.constant 0 : i32
    %5 = arith.cmpi slt, %3, %c0_i32_2 : i32
    %c0_i32_3 = arith.constant 0 : i32
    %6 = arith.cmpi slt, %2, %c0_i32_3 : i32
    %7 = arith.xori %5, %6 : i1
    %8 = arith.andi %7, %4 : i1
    %9 = arith.addi %3, %2 : i32
    %10 = arith.select %8, %9, %3 : i32
    %c0_i32_4 = arith.constant 0 : i32
    %c0_i32_5 = arith.constant 0 : i32
    return %10, %c0_i32_4 : i32, i32
  }
  func.func @transform_4(%arg0: i32, %arg1: i32) -> (i32, i32, i32) {
    %c0_i32 = arith.constant 0 : i32
    %c0_i32_0 = arith.constant 0 : i32
    %c0_i32_1 = arith.constant 0 : i32
    return %arg0, %c0_i32, %c0_i32_0 : i32, i32, i32
  }
}

</mosaic_0001>

<bundles_post_ra>
// kernel: tpu_custom_call.1
= control target key start
LH: loop header
LB: loop body
LE: loop exit
PB: predicated region body
PF: predicated region fallthrough
CT: control target
= control target key end

     0   :  { %9 = vsyncpa [#allocation3], 0  ;;  %s310_s0 = inlined_call_operand.vmem [shape: f32[8,32], index: 0, kind: input, shape index: {}]   ;;  %s311_s1 = inlined_call_operand.hbm [shape: f32[8,32], index: 1, kind: input, shape index: {}]   ;;  %s312_s2 = inlined_call_operand.hbm [shape: f32[8,32], index: 2, kind: input, shape index: {}]   ;;  %s313_s3 = inlined_call_operand.vmem [shape: s32[8,1], index: 3, kind: input, shape index: {}]   ;;  %s314_s4 = inlined_call_operand.hbm [shape: f32[1,1,128], index: 4, kind: output, shape index: {}]  }
   0x1   :  { %10 = vsyncpa [#allocation6], 0 }
   0x2   :  { %11 = vsyncpa [#allocation4], 0  ;;  %s19_s17 = sshll.u32 %s311_s1, 4  ;;  %s265_s18 = smov [#allocation2]   ;;  %s20_s17 = int_to_ptr.hbm [resolvable:$true] %s19_s17 }
   0x3   :  { %s21_s19 = sshll.u32 %s265_s18, 4  ;;  %s30_s22 = sshll.u32 %s312_s2, 4  ;;  %s22_s19 = int_to_ptr.vmem [resolvable:$true] %s21_s19  ;;  %s31_s22 = int_to_ptr.hbm [resolvable:$true] %s30_s22 }
   0x4   :  { %24 = dma.hbm_to_vmem [thread:$0]  %s20_s17, 128, %s22_s19, [#allocation3]  }
   0x5   :  { %s266_s23 = smov [#allocation5]  }
   0x6   :  { %s32_s24 = sshll.u32 %s266_s23, 4  ;;  %s33_s24 = int_to_ptr.vmem [resolvable:$true] %s32_s24 }
   0x7   :  { %35 = dma.hbm_to_vmem [thread:$0]  %s31_s22, 128, %s33_s24, [#allocation6]  }
   0x8   :  { %259 = dma.done.wait [#allocation3], 128  }
   0x9   :  { %260 = vsyncadd [#allocation3], 4294967168 }
   0xa   :  { %261 = dma.done.wait [#allocation6], 128  }
   0xb   :  { %262 = vsyncadd [#allocation6], 4294967168  ;;  %v267_v0 = vmov 0   ;;  %v81_v1 = vld [vmem:[%s313_s3] sm:$0xff]  ;;  %v52_v2 = vld [vmem:[#allocation5] sm:$0xff]  ;;  %vm53_vm0 = vcmask 261120   ;;  %v82_v5 = vlaneseq }
   0xc   :  { %186 = vset.pattern.permute.xlu0 %v267_v0  ;;  %174 = vmatpush.xpose.msk.msra.mxu0 %vm53_vm0, %v52_v2  ;;  %v268_v3 = vmov 0.0   ;;  %v51_v4 = vld [vmem:[%s310_s0] sm:$0xff]  ;;  %vm140_vm7 = vcmask 64512   ;;  %s269_s3 = smov [#allocation7]   ;;  %s163_s5 = sshll.u32 %s314_s4, 4  ;;  %s164_s5 = int_to_ptr.hbm [resolvable:$true] %s163_s5 }
   0xd   :  { %85 = vperm.xlu0 %186, %v81_v1   ;;  %50 = vst [vmem:[#allocation7] sm:$0x1] %v268_v3  ;;  %v83_v6 = vand.u32 127, %v82_v5  ;;  %v80_v9 = vld [vmem:[#allocation2] sm:$0xff]  ;;  %s161_s27 = sshll.u32 %s269_s3, 4  ;;  %s162_s27 = int_to_ptr.vmem [resolvable:$true] %s161_s27 }
   0xf   :  { %175 = vmatmul.msk.f32.vlgmr.msra.gmra.mxu0 %vm53_vm0, %v51_v4  ;;  %vm122_vm3 = vcmp.lt.s32.totalorder %v83_v6, 8 }
  0x14   :  { %v139_v23 = vld [vmem:[#allocation7] sm:$0x1] }
  0x7f   :  { %v86_v7 = vpop.permute.xlu0 %85 }
  0x80   :  { %vm87_vm1 = vcmp.eq.s32.totalorder %v83_v6, %v86_v7 }
  0x81   :  { %v176_v8 = vsel %vm87_vm1, 1.0, %v268_v3 }
  0x82   :  { %177 = vmatpush.xpose.msk.msra.mxu1 %vm53_vm0, %v176_v8 }
  0x85   :  { %178 = vmatmul.msk.f32.vlgmr.msra.gmra.mxu1 %vm53_vm0, %v80_v9 }
  0x8c   :  { %v77_v10 = vpop.f32.mrf.mxu0 }
  0x8d   :  { %vm129_vm2 = vcmp.lt.f32.partialorder %v77_v10, 0.8 }
 0x102   :  { %v113_v11 = vpop.f32.mrf.mxu1 }
 0x103   :  { %vm128_vm4 = vcmp.lt.f32.partialorder %v113_v11, 0.8  ;;  %v132_v12 = vsub.f32 %v77_v10, %v113_v11 }
 0x104   :  { %vm130_vm5 = vmand %vm128_vm4, %vm129_vm2 }
 0x105   :  { %v133_v13 = vmul.f32 %v132_v12, %v132_v12  ;;  %vm131_vm6 = vmand %vm130_vm5, %vm122_vm3 }
 0x107   :  { %v134_v14 = vsel %vm131_vm6, %v133_v13, 0.0 }
 0x108   :  { %v141_v15 = vsel %vm140_vm7, %v134_v14, 0.0 }
 0x109   :  { %142 = vadd.xlane.f32.xlu0 %v141_v15 }
 0x17c   :  { %v143_v16 = vpop.xlane.xlu0 %142 }
 0x17d   :  { %v144_v17 = vrot.slane %v143_v16, 4 }
 0x17f   :  { %v145_v18 = vadd.f32 %v144_v17, %v143_v16 }
 0x181   :  { %v146_v19 = vrot.slane %v145_v18, 2 }
 0x183   :  { %v147_v20 = vadd.f32 %v146_v19, %v145_v18 }
 0x185   :  { %v148_v21 = vrot.slane %v147_v20, 1 }
 0x187   :  { %v149_v22 = vadd.f32 %v148_v21, %v147_v20 }
 0x189   :  { %179 = vpush %v149_v22 }
 0x1ba   :  { %s180_s0 = spop %179 }
 0x1bb   :  { %s152_s28 = smul.f32 0.00515625, %s180_s0 }
 0x1bd   :  { %v153_v24 = vstv %s152_s28 }
 0x1be   :  { %v154_v25 = vadd.f32 %v153_v24, %v139_v23 }
 0x1c0   :  { %155 = vst [vmem:[#allocation7] sm:$0x1] %v154_v25 }
 0x1c1   :  { %166 = dma.vmem_to_hbm [thread:$0]  %s162_s27, 16, %s164_s5, [#allocation4]  }
 0x1c2   :  { %263 = dma.done.wait [#allocation4], 16  }
 0x1c3   :  { %264 = vsyncadd [#allocation4], 4294967280 }
 0x1c4   :  { %171 = vsyncpa [#allocation3], 1 }
 0x1c5   :  { %172 = vsyncpa [#allocation6], 1 }
 0x1c6   :  { %173 = vsyncpa [#allocation4], 1 }

</bundles_post_ra>
